<compile_context>
chip_gen: v7x
topology: tpu7x:2x2x1
jax: 0.10.0
libtpu: 0.0.40
codegen_flags: <defaults>
</compile_context>

<pallas_src>
import math

import jax
import jax.numpy as jnp
from jax.experimental import pallas as pl
from jax.experimental.pallas import tpu as pltpu

_LANE_CAP = 8192            # max lane-dim elements for the lane-dense view
_MIB = 1024 * 1024


def _build_pe_table(d_model: int, max_seq_length: int) -> jnp.ndarray:
    """Precompute the [max_seq_length, d_model] sinusoidal table (torch init)."""
    position = jnp.arange(max_seq_length, dtype=jnp.float32)[:, None]           # [L, 1]
    div_term = jnp.exp(
        jnp.arange(0, d_model, 2, dtype=jnp.float32) * (-math.log(10000.0) / d_model)
    )                                                                             # [ceil(D/2)]
    pe = jnp.zeros((max_seq_length, d_model), dtype=jnp.float32)
    pe = pe.at[:, 0::2].set(jnp.sin(position * div_term))
    if d_model % 2 == 1:
        pe = pe.at[:, 1::2].set(jnp.cos(position * div_term[:-1]))
    else:
        pe = pe.at[:, 1::2].set(jnp.cos(position * div_term))
    return pe


def _pe_add_kernel(x_ref, pe_ref, o_ref):
    # Batch dim is squeezed away by the BlockSpec: plain lane-aligned 2-D add.
    o_ref[...] = x_ref[...] + pe_ref[...]


def _choose_layout(seq: int, d_model: int):
    """Factor seq*d_model into (ROWS, LANE) with LANE the largest multiple of
    128 (<= _LANE_CAP) that divides the product (lane-dense stores).  Falls
    back to the natural (seq, d_model) layout when seq*d_model % 128 != 0."""
    total = seq * d_model
    if total % 128 == 0:
        start = min(_LANE_CAP, total)
        start -= start % 128
        for lane in range(start, 127, -128):
            if total % lane == 0:
                return total // lane, lane
    return seq, d_model


def _device_tuning():
    """(target_tile_bytes, vmem_limit_cap) per TPU generation."""
    try:
        vmem_cap = pltpu.get_tpu_info().vmem_capacity_bytes
    except Exception:
        vmem_cap = 64 * _MIB            # unknown -> assume v7x-sized VMEM
    if vmem_cap >= 100 * _MIB:          # v5e / v6e: 128 MiB physical VMEM
        return 8 * _MIB, 64 * _MIB
    return 4 * _MIB, 48 * _MIB          # v7x: 64 MiB physical VMEM


@jax.jit
def _pe_forward_impl(x: jnp.ndarray, pe_table: jnp.ndarray) -> jnp.ndarray:
    B, S, D = x.shape
    itemsize = jnp.dtype(x.dtype).itemsize
    target_tile_bytes, vmem_cap = _device_tuning()

    rows, lane = _choose_layout(S, D)

    # Dtype-aware sublane granularity: f32 -> 8, bf16 -> 16, int8/fp8 -> 32.
    sub = max(8, 32 // itemsize)
    rows_per_tile = max(sub, (target_tile_bytes // (lane * itemsize)) // sub * sub)
    tr = rows if rows <= rows_per_tile else rows_per_tile

    # Megacore guard (v7x has 2 TCs): avoid a degenerate 1-step grid when the
    # rows can be split; at most one extra ~0.35us grid step on v5e/v6e.
    row_tiles = (rows + tr - 1) // tr
    if row_tiles * B < 2 and rows >= 2 * sub:
        half = (rows + 1) // 2
        tr = ((half + sub - 1) // sub) * sub
        row_tiles = (rows + tr - 1) // tr

    # Scoped-VMEM limit from the real footprint (x, pe, out each
    # double-buffered by the pipeliner) with 2x headroom, clamped per gen.
    tile_bytes = tr * lane * itemsize
    vmem_limit = int(min(vmem_cap, max(32 * _MIB, 2 * 6 * tile_bytes)))

    # Layout plumbing only (bitcasts / fused under jit): lane-dense views.
    pe_view = pe_table[:S, :].astype(x.dtype).reshape(rows, lane)   # [ROWS, LANE]
    x_view = x.reshape(B, rows, lane)                               # [B, ROWS, LANE]

    out = pl.pallas_call(
        _pe_add_kernel,
        out_shape=jax.ShapeDtypeStruct((B, rows, lane), x.dtype),
        grid_spec=pltpu.PrefetchScalarGridSpec(
            num_scalar_prefetch=0,
            grid=(row_tiles, B),        # batch innermost -> pe tile stays resident
            in_specs=[
                pl.BlockSpec((None, tr, lane), lambda t, b: (b, t, 0)),
                pl.BlockSpec((tr, lane), lambda t, b: (t, 0)),
            ],
            out_specs=pl.BlockSpec((None, tr, lane), lambda t, b: (b, t, 0)),
        ),
        compiler_params=pltpu.CompilerParams(
            dimension_semantics=("parallel", "parallel"),
            vmem_limit_bytes=vmem_limit,
        ),
    )(x_view, pe_view)

    return out.reshape(B, S, D)


def positional_encoding_forward(x: jnp.ndarray, pe_table: jnp.ndarray) -> jnp.ndarray:
    """Adds sinusoidal positional encodings to x ([B, S, D]). Dropout = identity (eval)."""
    if x.ndim != 3:
        raise ValueError(f"Expected 3D input [batch, seq, features], got {x.ndim}D")
    _, S, D = x.shape
    if S > pe_table.shape[0]:
        raise RuntimeError(
            f"Input sequence length {S} exceeds maximum pre-computed length "
            f"{pe_table.shape[0]}."
        )
    if D != pe_table.shape[1]:
        raise ValueError(
            f"Input feature dimension {D} doesn't match model dimension {pe_table.shape[1]}"
        )
    return _pe_forward_impl(x, pe_table)


if __name__ == "__main__":
    d_model = 32
    max_seq_length = 100
    batch, seq = 2, 8

    key = jax.random.PRNGKey(0)
    x = jax.random.normal(key, (batch, seq, d_model), dtype=jnp.float32)

    pe_table = _build_pe_table(d_model, max_seq_length)

    # Pure-JAX reference (dropout identity in eval mode).
    ref = x + pe_table[None, :seq, :]

    out = positional_encoding_forward(x, pe_table)
    out = jax.block_until_ready(out)

    assert out.shape == x.shape
    assert jnp.allclose(out, ref, atol=1e-6), "mismatch vs reference"

    print("KERNEL_OK")
</pallas_src>

<mosaic_0001>
module attributes {stable_mosaic.version = 11 : i64} {
  func.func @_pe_add_kernel(%arg0: i32, %arg1: i32, %arg2: memref<1x1x256xf32, #tpu.memory_space<vmem>>, %arg3: memref<1x256xf32, #tpu.memory_space<vmem>>, %arg4: memref<1x1x256xf32, #tpu.memory_space<vmem>>) attributes {dimension_semantics = [#tpu.dimension_semantics<parallel>, #tpu.dimension_semantics<parallel>], iteration_bounds = array<i64: 1, 2>, scalar_prefetch = 0 : i64, scratch_operands = 0 : i64, tpu.core_type = #tpu.core_type<tc>, window_params = [{transform_indices = @transform_0, window_bounds = array<i64: 1, 1, 256>}, {transform_indices = @transform_1, window_bounds = array<i64: 1, 256>}, {transform_indices = @transform_2, window_bounds = array<i64: 1, 1, 256>}]} {
    %c0 = arith.constant 0 : index
    %c0_0 = arith.constant 0 : index
    %c0_1 = arith.constant 0 : index
    %0 = vector.load %arg2[%c0, %c0_0, %c0_1] : memref<1x1x256xf32, #tpu.memory_space<vmem>>, vector<1x1x256xf32>
    %1 = vector.shape_cast %0 : vector<1x1x256xf32> to vector<1x256xf32>
    %c0_2 = arith.constant 0 : index
    %c0_3 = arith.constant 0 : index
    %2 = vector.load %arg3[%c0_2, %c0_3] : memref<1x256xf32, #tpu.memory_space<vmem>>, vector<1x256xf32>
    %3 = arith.addf %1, %2 : vector<1x256xf32>
    %c0_4 = arith.constant 0 : index
    %c0_5 = arith.constant 0 : index
    %c0_6 = arith.constant 0 : index
    %4 = vector.load %arg4[%c0_4, %c0_5, %c0_6] : memref<1x1x256xf32, #tpu.memory_space<vmem>>, vector<1x1x256xf32>
    %5 = vector.shape_cast %4 : vector<1x1x256xf32> to vector<1x256xf32>
    %6 = vector.shape_cast %3 : vector<1x256xf32> to vector<1x1x256xf32>
    tpu.vector_store %arg4[%c0_4, %c0_5, %c0_6], %6 {strides = array<i32>} : memref<1x1x256xf32, #tpu.memory_space<vmem>>, vector<1x1x256xf32>,
    return
  }
  func.func @transform_0(%arg0: i32, %arg1: i32) -> (i32, i32, i32) {
    %c0_i32 = arith.constant 0 : i32
    %c0_i32_0 = arith.constant 0 : i32
    return %arg1, %arg0, %c0_i32 : i32, i32, i32
  }
  func.func @transform_1(%arg0: i32, %arg1: i32) -> (i32, i32) {
    %c0_i32 = arith.constant 0 : i32
    %c0_i32_0 = arith.constant 0 : i32
    return %arg0, %c0_i32 : i32, i32
  }
  func.func @transform_2(%arg0: i32, %arg1: i32) -> (i32, i32, i32) {
    %c0_i32 = arith.constant 0 : i32
    %c0_i32_0 = arith.constant 0 : i32
    return %arg1, %arg0, %c0_i32 : i32, i32, i32
  }
}

</mosaic_0001>

<bundles_post_ra>
// kernel: _pe_forward_impl.1
= control target key start
LH: loop header
LB: loop body
LE: loop exit
PB: predicated region body
PF: predicated region fallthrough
CT: control target
= control target key end

     0   :  { %s372_s9 = smov 0   ;;  %s374_s10 = smov 0   ;;  %s396_s0 = inlined_call_operand.vmem [shape: f32[2,1,256], index: 0, kind: input, shape index: {}]   ;;  %s397_s1 = inlined_call_operand.vmem [shape: f32[1,256], index: 1, kind: input, shape index: {}]   ;;  %s398_s2 = inlined_call_operand.vmem [shape: f32[2,1,256], index: 2, kind: output, shape index: {}]  }
   0x1   :  { %s376_s11 = smov 0  }
   0x2 LB: > { %s21_s12 = sadd.s32 1, %s351_s10  ;;  %p304_p0 = scmp.ge.s32.totalorder %s355_s11, 1  ;;  %s355_s11 = sphi %s376_s11, %s12_s11   ;;  %s351_s10 = sphi %s374_s10, %s400_s10   ;;  %s347_s9 = sphi %s372_s9, %s399_s9  }
   0x3   : > { %p22_p1 = scmp.ge.s32.totalorder %s21_s12, 2  ;;  %p140_p2 = scmp.lt.s32.totalorder %s355_s11, 3 }
   0x5   : > { %s402_s12 = smov (%p22_p1, %s21_s12), 0  ;;  %p141_p3 = pnand %p304_p0, %p140_p2 }
   0x6   : > { %p172_p4 = scmp.lt.s32.totalorder (!%p141_p3), %s347_s9, 1  ;;  %v195_v0 = vlaneseq (!%p141_p3)  ;;  %v193_v1 = vld [vmem:[%s397_s1] sm:$0x3] (!%p141_p3) }
   0x7   : > { %144 = sbr.rel (%p141_p3) target bundleno = 21 (0x15), region = 28 }
   0x8   : > { %vm197_vm0 = vcmp.lt.s32.totalorder (!%p141_p3), %v195_v0, 256 }
   0xe   : > { %s404_s9 = smov (!%p172_p4, %s347_s9), 1 }
   0xf   : > { %s305_s13 = sshll.u32 %s404_s9, 1 }
  0x10   : > { %s179_s18 = scalar_lea.vmem %s396_s0, %s305_s13  ;;  %s191_s21 = scalar_lea.vmem %s398_s2, %s305_s13 }
  0x11   : > { %v192_v2 = vld [vmem:[%s179_s18] sm:$0x3] }
  0x12   : > { %v194_v3 = vadd.f32 %v193_v1, %v192_v2 }
  0x14   : > { %199 = vst.msk [vmem:[%s191_s21] sm:$0x3] %vm197_vm0, %v194_v3 }
  0x15 PF: > { %s12_s11 = sadd.s32 1, %s355_s11   ;;  %s399_s9 = smov %s351_s10 }
  0x16   : > { %p9_p5 = scmp.ge.s32.totalorder %s12_s11, 4   ;;  %s400_s10 = smov %s402_s12 }
  0x18   :  { %11 = sbr.rel (!%p9_p5) target bundleno = 2 (0x2), region = 61 }

</bundles_post_ra>
